<compile_context>
chip_gen: v7x
topology: tpu7x:2x2x1
jax: 0.10.0
libtpu: 0.0.40
codegen_flags: <defaults>
</compile_context>

<pallas_src>
import functools

import jax
import jax.numpy as jnp
from jax.experimental import pallas as pl
from jax.experimental.pallas import tpu as pltpu


def _round_up(x, m):
    return (x + m - 1) // m * m


def _pad_last(a, n_pad):
    pad = n_pad - a.shape[-1]
    if pad == 0:
        return a
    return jnp.pad(a, [(0, 0)] * (a.ndim - 1) + [(0, pad)])


# --------------------------------------------------------------------------- #
# Kernel
# --------------------------------------------------------------------------- #
def gmu_kernel(x1_ref, x2_ref, w1_ref, b1_ref, w2_ref, b2_ref,
               wz1_ref, wz2_ref, bz_ref, out_ref):
    # In-kernel cast of the activation tile to the weight dtype (bf16 on the fast
    # path, no-op on the f32 path).  f32 MXU accumulation either way.
    x1 = x1_ref[...].astype(w1_ref.dtype)
    x2 = x2_ref[...].astype(w2_ref.dtype)

    # h1 = tanh(x1 @ W1 + b1), h2 = tanh(x2 @ W2 + b2)
    h1 = jnp.tanh(
        jnp.dot(x1, w1_ref[...], preferred_element_type=jnp.float32)
        + b1_ref[...])
    h2 = jnp.tanh(
        jnp.dot(x2, w2_ref[...], preferred_element_type=jnp.float32)
        + b2_ref[...])

    # z = sigmoid([h1, h2] @ Wz + bz) as VPU multiply + XLU lane reduction
    # (concat expressed as the split wz halves; avoids two N=1 MXU matmuls).
    s = jnp.sum(h1 * wz1_ref[...] + h2 * wz2_ref[...],
                axis=-1, keepdims=True) + bz_ref[0]          # (tb, 1)
    z = jax.nn.sigmoid(s)

    # Blend: z*h1 + (1-z)*h2 == h2 + z*(h1 - h2)  (one fewer full-tile multiply).
    out_ref[...] = (h2 + z * (h1 - h2)).astype(out_ref.dtype)


# --------------------------------------------------------------------------- #
# Wrapper
# --------------------------------------------------------------------------- #
def prepare_params(params, *, use_bf16=True):
    """One-time padding / casting of the weights (do NOT redo this per call).

    Pads the output-feature dim to a multiple of 128 (lane-dense stores and gate
    reduction).  Padding is exact: b1/b2 and wz1/wz2 padded with zeros, so padded
    lanes are tanh(0)=0 and contribute nothing to the gate sum.
    """
    (w1, b1, w2, b2, wz1, wz2, bz) = params
    n = w1.shape[1]
    n_pad = _round_up(n, 128)
    mm_dtype = jnp.bfloat16 if use_bf16 else jnp.float32

    w1c = _pad_last(w1, n_pad).astype(mm_dtype)
    w2c = _pad_last(w2, n_pad).astype(mm_dtype)
    b1p = _pad_last(b1, n_pad).astype(jnp.float32)
    b2p = _pad_last(b2, n_pad).astype(jnp.float32)
    wz1p = _pad_last(wz1, n_pad).astype(jnp.float32)
    wz2p = _pad_last(wz2, n_pad).astype(jnp.float32)
    bz_s = bz.reshape((1,)).astype(jnp.float32)
    return (w1c, b1p, w2c, b2p, wz1p, wz2p, bz_s, n, n_pad)


def _vmem_footprint(tb, k1, k2, n_pad, x_bytes, w_bytes, out_bytes):
    acts = 2 * tb * (k1 + k2) * x_bytes                 # double-buffered x1/x2
    outs = 2 * tb * n_pad * out_bytes                   # double-buffered output
    wgts = 2 * ((k1 + k2) * n_pad * w_bytes             # W1/W2 (const index maps,
                + 4 * n_pad * 4)                        #  still 2 bufs) + b/wz rows
    return acts + outs + wgts


_VMEM_BUDGET = 48 * 1024 * 1024   # safe under v7x's 64 MiB-per-TC ceiling


def gated_multimodal_layer(x1, x2, prepared, *, batch_tile=1024,
                           out_dtype=jnp.float32, keep_padded=False):
    (w1c, b1p, w2c, b2p, wz1p, wz2p, bz_s, n, n_pad) = prepared
    B, k1 = x1.shape
    k2 = x2.shape[1]

    x_bytes = jnp.dtype(x1.dtype).itemsize
    w_bytes = jnp.dtype(w1c.dtype).itemsize
    out_bytes = jnp.dtype(out_dtype).itemsize

    # Batch tile: aim for >= 2 grid steps (dual-TC on v7x) when B allows, then
    # shrink until the double-buffered footprint fits the VMEM budget.
    if B <= batch_tile:
        tb = _round_up(pl.cdiv(B, 2), 8) if B >= 16 else B
    else:
        tb = batch_tile
    while tb > 8 and _vmem_footprint(tb, k1, k2, n_pad,
                                     x_bytes, w_bytes, out_bytes) > _VMEM_BUDGET:
        tb = max(8, _round_up(tb // 2, 8))

    footprint = _vmem_footprint(tb, k1, k2, n_pad, x_bytes, w_bytes, out_bytes)
    vmem_limit = int(min(56 * 1024 * 1024,
                         max(32 * 1024 * 1024, footprint + (4 << 20))))

    grid = (pl.cdiv(B, tb),)
    const = lambda i: (0, 0)     # weights/biases: same block every step (resident)
    batch = lambda i: (i, 0)     # activations/out: tiled along the batch grid axis

    out = pl.pallas_call(
        gmu_kernel,
        out_shape=jax.ShapeDtypeStruct((B, n_pad), out_dtype),
        grid=grid,
        in_specs=[
            pl.BlockSpec((tb, k1), batch),                           # x1 (f32)
            pl.BlockSpec((tb, k2), batch),                           # x2 (f32)
            pl.BlockSpec((k1, n_pad), const),                        # W1
            pl.BlockSpec((1, n_pad), const),                         # b1
            pl.BlockSpec((k2, n_pad), const),                        # W2
            pl.BlockSpec((1, n_pad), const),                         # b2
            pl.BlockSpec((1, n_pad), const),                         # wz (h1 half)
            pl.BlockSpec((1, n_pad), const),                         # wz (h2 half)
            pl.BlockSpec(memory_space=pltpu.MemorySpace.SMEM),       # bz scalar
        ],
        out_specs=pl.BlockSpec((tb, n_pad), batch),
        compiler_params=pltpu.CompilerParams(
            dimension_semantics=("parallel",),
            vmem_limit_bytes=vmem_limit,
        ),
    )(x1, x2, w1c, b1p, w2c, b2p, wz1p, wz2p, bz_s)

    if keep_padded or n_pad == n:
        return out
    return out[:, :n]


# --------------------------------------------------------------------------- #
# Init + reference (pure JAX)
# --------------------------------------------------------------------------- #
def init_params(key, size_in1, size_in2, size_out):
    """nn.Linear-style U(-1/sqrt(fan_in), 1/sqrt(fan_in)) init.  Weights stored
    pre-transposed as [in, out]; the gate weight (1, 2*size_out) is split into
    its h1/h2 halves (matching torch.cat((h1, h2), dim=1))."""
    ks = jax.random.split(key, 6)

    def lin(kw, kb, fan_in, fan_out):
        bound = 1.0 / jnp.sqrt(fan_in)
        w = jax.random.uniform(kw, (fan_in, fan_out), jnp.float32, -bound, bound)
        b = jax.random.uniform(kb, (1, fan_out), jnp.float32, -bound, bound)
        return w, b

    w1, b1 = lin(ks[0], ks[1], size_in1, size_out)
    w2, b2 = lin(ks[2], ks[3], size_in2, size_out)
    bound = 1.0 / jnp.sqrt(2 * size_out)
    wz = jax.random.uniform(ks[4], (1, 2 * size_out), jnp.float32, -bound, bound)
    bz = jax.random.uniform(ks[5], (1, 1), jnp.float32, -bound, bound)
    wz1, wz2 = wz[:, :size_out], wz[:, size_out:]
    return (w1, b1, w2, b2, wz1, wz2, bz)


def reference(x1, x2, params):
    (w1, b1, w2, b2, wz1, wz2, bz) = params
    h1 = jnp.tanh(x1 @ w1 + b1)
    h2 = jnp.tanh(x2 @ w2 + b2)
    h = jnp.concatenate([h1, h2], axis=1)
    wz = jnp.concatenate([wz1, wz2], axis=1)        # (1, 2*size_out)
    z = jax.nn.sigmoid(h @ wz.T + bz)               # (B, 1)
    return z * h1 + (1.0 - z) * h2


# --------------------------------------------------------------------------- #
# Demo / self-check
# --------------------------------------------------------------------------- #
if __name__ == "__main__":
    B, size_in1, size_in2, size_out = 8, 32, 48, 64

    key = jax.random.PRNGKey(0)
    kx1, kx2, kp = jax.random.split(key, 3)
    x1 = jax.random.normal(kx1, (B, size_in1), jnp.float32)
    x2 = jax.random.normal(kx2, (B, size_in2), jnp.float32)
    params = init_params(kp, size_in1, size_in2, size_out)

    ref = reference(x1, x2, params)

    # f32 matmul path: exact semantics check against the reference.
    prep_f32 = prepare_params(params, use_bf16=False)
    out_f32 = jax.block_until_ready(
        gated_multimodal_layer(x1, x2, prep_f32, out_dtype=jnp.float32))
    assert out_f32.shape == (B, size_out)
    assert jnp.allclose(out_f32, ref, atol=1e-5, rtol=1e-5), \
        float(jnp.max(jnp.abs(out_f32 - ref)))

    # bf16 matmul path (fast path, f32 output): looser tolerance vs f32 ref.
    prep_bf16 = prepare_params(params, use_bf16=True)
    out_bf = jax.block_until_ready(
        gated_multimodal_layer(x1, x2, prep_bf16, out_dtype=jnp.float32))
    assert out_bf.shape == (B, size_out)
    assert jnp.allclose(out_bf, ref, atol=2e-2, rtol=2e-2), \
        float(jnp.max(jnp.abs(out_bf - ref)))

    # bf16 output path (halved writeback): loosest tolerance.
    out_bf16 = jax.block_until_ready(
        gated_multimodal_layer(x1, x2, prep_bf16, out_dtype=jnp.bfloat16))
    assert out_bf16.shape == (B, size_out)
    assert jnp.allclose(out_bf16.astype(jnp.float32), ref, atol=3e-2, rtol=3e-2), \
        float(jnp.max(jnp.abs(out_bf16.astype(jnp.float32) - ref)))

    print("KERNEL_OK")
</pallas_src>

<mosaic_0001>
module attributes {stable_mosaic.version = 11 : i64} {
  func.func @gmu_kernel(%arg0: i32, %arg1: memref<8x32xf32, #tpu.memory_space<vmem>>, %arg2: memref<8x48xf32, #tpu.memory_space<vmem>>, %arg3: memref<32x128xf32, #tpu.memory_space<vmem>>, %arg4: memref<1x128xf32, #tpu.memory_space<vmem>>, %arg5: memref<48x128xf32, #tpu.memory_space<vmem>>, %arg6: memref<1x128xf32, #tpu.memory_space<vmem>>, %arg7: memref<1x128xf32, #tpu.memory_space<vmem>>, %arg8: memref<1x128xf32, #tpu.memory_space<vmem>>, %arg9: memref<1xf32, #tpu.memory_space<smem>>, %arg10: memref<8x128xf32, #tpu.memory_space<vmem>>) attributes {dimension_semantics = [#tpu.dimension_semantics<parallel>], iteration_bounds = array<i64: 1>, scalar_prefetch = 0 : i64, scratch_operands = 0 : i64, tpu.core_type = #tpu.core_type<tc>, window_params = [{transform_indices = @transform_0, window_bounds = array<i64: 8, 32>}, {transform_indices = @transform_1, window_bounds = array<i64: 8, 48>}, {pipeline_mode = #tpu.pipeline_mode<synchronous>, transform_indices = @transform_2, window_bounds = array<i64: 32, 128>}, {pipeline_mode = #tpu.pipeline_mode<synchronous>, transform_indices = @transform_3, window_bounds = array<i64: 1, 128>}, {pipeline_mode = #tpu.pipeline_mode<synchronous>, transform_indices = @transform_4, window_bounds = array<i64: 48, 128>}, {pipeline_mode = #tpu.pipeline_mode<synchronous>, transform_indices = @transform_5, window_bounds = array<i64: 1, 128>}, {pipeline_mode = #tpu.pipeline_mode<synchronous>, transform_indices = @transform_6, window_bounds = array<i64: 1, 128>}, {pipeline_mode = #tpu.pipeline_mode<synchronous>, transform_indices = @transform_7, window_bounds = array<i64: 1, 128>}, {transform_indices = @transform_8, window_bounds = array<i64: 1>}, {transform_indices = @transform_9, window_bounds = array<i64: 8, 128>}]} {
    %c0 = arith.constant 0 : index
    %c0_0 = arith.constant 0 : index
    %0 = vector.load %arg1[%c0, %c0_0] : memref<8x32xf32, #tpu.memory_space<vmem>>, vector<8x32xf32>
    %c0_1 = arith.constant 0 : index
    %c0_2 = arith.constant 0 : index
    %1 = vector.load %arg2[%c0_1, %c0_2] : memref<8x48xf32, #tpu.memory_space<vmem>>, vector<8x48xf32>
    %c0_3 = arith.constant 0 : index
    %c0_4 = arith.constant 0 : index
    %2 = vector.load %arg3[%c0_3, %c0_4] : memref<32x128xf32, #tpu.memory_space<vmem>>, vector<32x128xf32>
    %cst = arith.constant dense<0.000000e+00> : vector<8x128xf32>
    %3 = tpu.matmul %0, %2, %cst {dimension_numbers = #tpu.dot_dimension_numbers<[1], [0], [0], [1], [0, 0, 1, 1], [], []>} : vector<8x32xf32>, vector<32x128xf32>, vector<8x128xf32> -> vector<8x128xf32>
    %c0_5 = arith.constant 0 : index
    %c0_6 = arith.constant 0 : index
    %4 = vector.load %arg4[%c0_5, %c0_6] : memref<1x128xf32, #tpu.memory_space<vmem>>, vector<1x128xf32>
    %5 = vector.broadcast %4 : vector<1x128xf32> to vector<8x128xf32>
    %6 = arith.addf %3, %5 : vector<8x128xf32>
    %7 = math.tanh %6 : vector<8x128xf32>
    %c0_7 = arith.constant 0 : index
    %c0_8 = arith.constant 0 : index
    %8 = vector.load %arg5[%c0_7, %c0_8] : memref<48x128xf32, #tpu.memory_space<vmem>>, vector<48x128xf32>
    %cst_9 = arith.constant dense<0.000000e+00> : vector<8x128xf32>
    %9 = tpu.matmul %1, %8, %cst_9 {dimension_numbers = #tpu.dot_dimension_numbers<[1], [0], [0], [1], [0, 0, 1, 1], [], []>} : vector<8x48xf32>, vector<48x128xf32>, vector<8x128xf32> -> vector<8x128xf32>
    %c0_10 = arith.constant 0 : index
    %c0_11 = arith.constant 0 : index
    %10 = vector.load %arg6[%c0_10, %c0_11] : memref<1x128xf32, #tpu.memory_space<vmem>>, vector<1x128xf32>
    %11 = vector.broadcast %10 : vector<1x128xf32> to vector<8x128xf32>
    %12 = arith.addf %9, %11 : vector<8x128xf32>
    %13 = math.tanh %12 : vector<8x128xf32>
    %c0_12 = arith.constant 0 : index
    %c0_13 = arith.constant 0 : index
    %14 = vector.load %arg7[%c0_12, %c0_13] : memref<1x128xf32, #tpu.memory_space<vmem>>, vector<1x128xf32>
    %15 = vector.broadcast %14 : vector<1x128xf32> to vector<8x128xf32>
    %16 = arith.mulf %7, %15 : vector<8x128xf32>
    %c0_14 = arith.constant 0 : index
    %c0_15 = arith.constant 0 : index
    %17 = vector.load %arg8[%c0_14, %c0_15] : memref<1x128xf32, #tpu.memory_space<vmem>>, vector<1x128xf32>
    %18 = vector.broadcast %17 : vector<1x128xf32> to vector<8x128xf32>
    %19 = arith.mulf %13, %18 : vector<8x128xf32>
    %20 = arith.addf %16, %19 : vector<8x128xf32>
    %cst_16 = arith.constant dense<0.000000e+00> : vector<8xf32>
    %21 = vector.multi_reduction <add>, %20, %cst_16 [1] : vector<8x128xf32> to vector<8xf32>
    %22 = vector.shape_cast %21 : vector<8xf32> to vector<8x1xf32>
    %c0_17 = arith.constant 0 : index
    %23 = memref.load %arg9[%c0_17] : memref<1xf32, #tpu.memory_space<smem>>
    %24 = vector.broadcast %23 : f32 to vector<8x1xf32>
    %25 = arith.addf %22, %24 : vector<8x1xf32>
    %26 = arith.negf %25 : vector<8x1xf32>
    %27 = math.exp %26 : vector<8x1xf32>
    %cst_18 = arith.constant 1.000000e+00 : f32
    %28 = vector.broadcast %cst_18 : f32 to vector<8x1xf32>
    %29 = arith.addf %28, %27 : vector<8x1xf32>
    %30 = arith.divf %28, %29 : vector<8x1xf32>
    %31 = arith.subf %7, %13 : vector<8x128xf32>
    %32 = vector.broadcast %30 : vector<8x1xf32> to vector<8x128xf32>
    %33 = arith.mulf %32, %31 : vector<8x128xf32>
    %34 = arith.addf %13, %33 : vector<8x128xf32>
    %c0_19 = arith.constant 0 : index
    %c0_20 = arith.constant 0 : index
    %35 = vector.load %arg10[%c0_19, %c0_20] : memref<8x128xf32, #tpu.memory_space<vmem>>, vector<8x128xf32>
    tpu.vector_store %arg10[%c0_19, %c0_20], %34 {strides = array<i32>} : memref<8x128xf32, #tpu.memory_space<vmem>>, vector<8x128xf32>,
    return
  }
  func.func @transform_0(%arg0: i32) -> (i32, i32) {
    %c0_i32 = arith.constant 0 : i32
    %c0_i32_0 = arith.constant 0 : i32
    return %arg0, %c0_i32 : i32, i32
  }
  func.func @transform_1(%arg0: i32) -> (i32, i32) {
    %c0_i32 = arith.constant 0 : i32
    %c0_i32_0 = arith.constant 0 : i32
    return %arg0, %c0_i32 : i32, i32
  }
  func.func @transform_2(%arg0: i32) -> (i32, i32) {
    %c0_i32 = arith.constant 0 : i32
    %c0_i32_0 = arith.constant 0 : i32
    %c0_i32_1 = arith.constant 0 : i32
    return %c0_i32, %c0_i32_0 : i32, i32
  }
  func.func @transform_3(%arg0: i32) -> (i32, i32) {
    %c0_i32 = arith.constant 0 : i32
    %c0_i32_0 = arith.constant 0 : i32
    %c0_i32_1 = arith.constant 0 : i32
    return %c0_i32, %c0_i32_0 : i32, i32
  }
  func.func @transform_4(%arg0: i32) -> (i32, i32) {
    %c0_i32 = arith.constant 0 : i32
    %c0_i32_0 = arith.constant 0 : i32
    %c0_i32_1 = arith.constant 0 : i32
    return %c0_i32, %c0_i32_0 : i32, i32
  }
  func.func @transform_5(%arg0: i32) -> (i32, i32) {
    %c0_i32 = arith.constant 0 : i32
    %c0_i32_0 = arith.constant 0 : i32
    %c0_i32_1 = arith.constant 0 : i32
    return %c0_i32, %c0_i32_0 : i32, i32
  }
  func.func @transform_6(%arg0: i32) -> (i32, i32) {
    %c0_i32 = arith.constant 0 : i32
    %c0_i32_0 = arith.constant 0 : i32
    %c0_i32_1 = arith.constant 0 : i32
    return %c0_i32, %c0_i32_0 : i32, i32
  }
  func.func @transform_7(%arg0: i32) -> (i32, i32) {
    %c0_i32 = arith.constant 0 : i32
    %c0_i32_0 = arith.constant 0 : i32
    %c0_i32_1 = arith.constant 0 : i32
    return %c0_i32, %c0_i32_0 : i32, i32
  }
  func.func @transform_8(%arg0: i32) -> i32 {
    %c0_i32 = arith.constant 0 : i32
    %c0_i32_0 = arith.constant 0 : i32
    return %c0_i32 : i32
  }
  func.func @transform_9(%arg0: i32) -> (i32, i32) {
    %c0_i32 = arith.constant 0 : i32
    %c0_i32_0 = arith.constant 0 : i32
    return %arg0, %c0_i32 : i32, i32
  }
}

</mosaic_0001>

<bundles_post_ra>
// kernel: tpu_custom_call.1
= control target key start
LH: loop header
LB: loop body
LE: loop exit
PB: predicated region body
PF: predicated region fallthrough
CT: control target
= control target key end

     0   :  { %15 = vsyncpa [#allocation4], 0  ;;  %s641_s0 = inlined_call_operand.hbm [shape: f32[8,32], index: 0, kind: input, shape index: {}]   ;;  %s642_s1 = inlined_call_operand.hbm [shape: f32[8,48], index: 1, kind: input, shape index: {}]   ;;  %s643_s2 = inlined_call_operand.hbm [shape: f32[32,128], index: 2, kind: input, shape index: {}]   ;;  %s644_s3 = inlined_call_operand.vmem [shape: f32[1,128], index: 3, kind: input, shape index: {}]   ;;  %s645_s4 = inlined_call_operand.hbm [shape: f32[48,128], index: 4, kind: input, shape index: {}]   ;;  %s646_s5 = inlined_call_operand.vmem [shape: f32[1,128], index: 5, kind: input, shape index: {}]   ;;  %s647_s6 = inlined_call_operand.vmem [shape: f32[1,128], index: 6, kind: input, shape index: {}]   ;;  %s648_s7 = inlined_call_operand.vmem [shape: f32[1,128], index: 7, kind: input, shape index: {}]   ;;  %s649_s8 = inlined_call_operand.<no memory space> [shape: f32[1], index: 8, kind: input, shape index: {}]   ;;  %s650_s9 = inlined_call_operand.hbm [shape: f32[8,128], index: 9, kind: output, shape index: {}]  }
   0x1   :  { %16 = vsyncpa [#allocation7], 0 }
   0x2   :  { %17 = vsyncpa [#allocation10], 0 }
   0x3   :  { %18 = vsyncpa [#allocation5], 0  ;;  %s506_s30 = smov [#allocation6]   ;;  %s507_s11 = smov [#allocation3]  }
   0x4   :  { %s35_s10 = sshll.u32 %s506_s30, 4  ;;  %s25_s12 = sshll.u32 %s507_s11, 4  ;;  %s36_s10 = int_to_ptr.vmem [resolvable:$true] %s35_s10  ;;  %s26_s12 = int_to_ptr.vmem [resolvable:$true] %s25_s12 }
   0x5   :  { %s388_s15 = scalar_lea.hbm %s642_s1, 128 }
   0x6   :  { %p389_p0 = scmp.ne.s32.totalorder %s642_s1, %s388_s15  ;;  %p392_p1 = scmp.lt.u32.totalorder %s388_s15, %s642_s1 }
   0x8   :  { %p394_p2 = pnand %p392_p1, %p389_p0 }
   0xa   :  { %397 = shalt.err (!%p394_p2)
}
   0xb   :  { %s398_s20 = scalar_lea.vmem %s36_s10, 128  ;;  %p403_p4 = scmp.lt.s32.totalorder %s36_s10, %s36_s10 }
   0xc   :  { %p399_p3 = scmp.ne.s32.totalorder %s36_s10, %s398_s20  ;;  %p404_p5 = scmp.lt.s32.totalorder %s398_s20, %s398_s20 }
   0xe   :  { %p405_p6 = por %p404_p5, %p403_p4 }
  0x10   :  { %p406_p7 = pnand %p405_p6, %p399_p3 }
  0x12   :  { %409 = shalt.err (!%p406_p7)
}
  0x13   :  { %38 = dma.hbm_to_vmem [thread:$0]  %s642_s1, 128, %s36_s10, [#allocation7]  }
  0x14   :  { %s410_s25 = scalar_lea.hbm %s641_s0, 128 }
  0x15   :  { %p411_p8 = scmp.ne.s32.totalorder %s641_s0, %s410_s25  ;;  %p414_p9 = scmp.lt.u32.totalorder %s410_s25, %s641_s0 }
  0x17   :  { %p416_p10 = pnand %p414_p9, %p411_p8 }
  0x19   :  { %419 = shalt.err (!%p416_p10)
}
  0x1a   :  { %s420_s30 = scalar_lea.vmem %s26_s12, 128  ;;  %p425_p12 = scmp.lt.s32.totalorder %s26_s12, %s26_s12 }
  0x1b   :  { %p421_p11 = scmp.ne.s32.totalorder %s26_s12, %s420_s30  ;;  %p426_p13 = scmp.lt.s32.totalorder %s420_s30, %s420_s30 }
  0x1d   :  { %p427_p0 = por %p426_p13, %p425_p12 }
  0x1f   :  { %p428_p1 = pnand %p427_p0, %p421_p11 }
  0x21   :  { %431 = shalt.err (!%p428_p1)
}
  0x22   :  { %28 = dma.hbm_to_vmem [thread:$0]  %s641_s0, 128, %s26_s12, [#allocation4]  }
  0x23   :  { %s508_s11 = smov [#allocation8]   ;;  %s432_s16 = scalar_lea.hbm %s643_s2, 512 }
  0x24   :  { %s44_s13 = sshll.u32 %s508_s11, 4  ;;  %p433_p2 = scmp.ne.s32.totalorder %s643_s2, %s432_s16  ;;  %s45_s13 = int_to_ptr.vmem [resolvable:$true] %s44_s13 }
  0x25   :  { %p436_p3 = scmp.lt.u32.totalorder %s432_s16, %s643_s2 }
  0x27   :  { %p438_p4 = pnand %p436_p3, %p433_p2 }
  0x29   :  { %441 = shalt.err (!%p438_p4)
}
  0x2a   :  { %s442_s21 = scalar_lea.vmem %s45_s13, 512  ;;  %p447_p6 = scmp.lt.s32.totalorder %s45_s13, %s45_s13 }
  0x2b   :  { %p443_p5 = scmp.ne.s32.totalorder %s45_s13, %s442_s21  ;;  %p448_p7 = scmp.lt.s32.totalorder %s442_s21, %s442_s21 }
  0x2d   :  { %p449_p8 = por %p448_p7, %p447_p6 }
  0x2f   :  { %p450_p9 = pnand %p449_p8, %p443_p5 }
  0x31   :  { %453 = shalt.err (!%p450_p9)
}
  0x32   :  { %s509_s0 = smov 128   ;;  %s510_s12 = smov 8  }
  0x33   :  { %50 = dma.hbm_to_vmem [thread:$0]  %s643_s2, 512, %s45_s13, [#allocation7], %s509_s0, %s509_s0, %s510_s12  }
  0x34   :  { %s511_s24 = smov [#allocation9]   ;;  %s454_s28 = scalar_lea.hbm %s645_s4, 768 }
  0x35   :  { %s58_s25 = sshll.u32 %s511_s24, 4  ;;  %p455_p10 = scmp.ne.s32.totalorder %s645_s4, %s454_s28  ;;  %s59_s25 = int_to_ptr.vmem [resolvable:$true] %s58_s25 }
  0x36   :  { %p458_p11 = scmp.lt.u32.totalorder %s454_s28, %s645_s4 }
  0x38   :  { %p460_p12 = pnand %p458_p11, %p455_p10 }
  0x3a   :  { %463 = shalt.err (!%p460_p12)
}
  0x3b   :  { %s464_s11 = scalar_lea.vmem %s59_s25, 768  ;;  %p469_p0 = scmp.lt.s32.totalorder %s59_s25, %s59_s25 }
  0x3c   :  { %p465_p13 = scmp.ne.s32.totalorder %s59_s25, %s464_s11  ;;  %p470_p1 = scmp.lt.s32.totalorder %s464_s11, %s464_s11 }
  0x3e   :  { %p471_p2 = por %p470_p1, %p469_p0 }
  0x40   :  { %p472_p3 = pnand %p471_p2, %p465_p13 }
  0x42   :  { %475 = shalt.err (!%p472_p3)
}
  0x43   :  { %64 = dma.hbm_to_vmem [thread:$0]  %s645_s4, 768, %s59_s25, [#allocation10], %s509_s0, %s509_s0, %s510_s12  }
  0x44   :  { %498 = dma.done.wait [#allocation4], 128  }
  0x45   :  { %499 = vsyncadd [#allocation4], 4294967168 }
  0x46   :  { %500 = dma.done.wait [#allocation7], 640  }
  0x47   :  { %501 = vsyncadd [#allocation7], 4294966656 }
  0x48   :  { %502 = dma.done.wait [#allocation10], 768  }
  0x49   :  { %503 = vsyncadd [#allocation10], 4294966528  ;;  %v512_v0 = vmov 0.0|0.0   ;;  %vm513_vm0 = vmmov 0   ;;  %v514_v1 = vmov 0.0   ;;  %v173_v2 = vld [vmem:[#allocation9] sm:$0xff]  ;;  %v281_v34 = vstv %s649_s8 }
  0x4a   :  { %361 = vmatprep.subr.bf16.mxu1 %v512_v0  ;;  %355 = vmatprep.subr.bf16.mxu0 %v512_v0  ;;  %v174_v3 = vld [vmem:[#allocation9 + $0x8] sm:$0xff]  ;;  %v87_v4 = vld [vmem:[#allocation8] sm:$0xff]  ;;  %v175_v7 = vld [vmem:[#allocation9 + $0x10] sm:$0xff]  ;;  %vm98_vm1 = vcmask 261120   ;;  %vm186_vm2 = vcmask 392192  }
  0x4b   :  { %337 = vmatprep.mubr.msk.f32.mxu0 %vm513_vm0, %v514_v1  ;;  %352 = vmatprep.mubr.msk.f32.mxu1 %vm513_vm0, %v514_v1  ;;  %v362_v5 = vpack.c.bf16 %v174_v3, %v173_v2  ;;  %v88_v6 = vld [vmem:[#allocation8 + $0x8] sm:$0xff]  ;;  %v176_v8 = vld [vmem:[#allocation9 + $0x18] sm:$0xff]  ;;  %v89_v10 = vld [vmem:[#allocation8 + $0x10] sm:$0xff] }
  0x4c   :  { %v356_v9 = vpack.c.bf16 %v88_v6, %v87_v4  ;;  %v90_v11 = vld [vmem:[#allocation8 + $0x18] sm:$0xff]  ;;  %v365_v12 = vpack.c.bf16 %v176_v8, %v175_v7  ;;  %v177_v14 = vld [vmem:[#allocation9 + $0x20] sm:$0xff]  ;;  %v178_v15 = vld [vmem:[#allocation9 + $0x28] sm:$0xff] }
  0x4d   :  { %363 = vmatpush3.bf16.msra.mxu1 %v362_v5  ;;  %v359_v13 = vpack.c.bf16 %v90_v11, %v89_v10  ;;  %v368_v16 = vpack.c.bf16 %v178_v15, %v177_v14  ;;  %v85_v17 = vld [vmem:[#allocation3] sm:$0xff]  ;;  %v86_v18 = vld [vmem:[#allocation6] sm:$0xff] }
  0x4e   :  { %357 = vmatpush3.bf16.msra.mxu0 %v356_v9  ;;  %364 = vmatprep.subr.bf16.mxu1 %v512_v0  ;;  %v310_v19 = vld [vmem:[%s644_s3] ss:$0 sm:$0xff] }
  0x4f   :  { %358 = vmatprep.subr.bf16.mxu0 %v512_v0  ;;  %v312_v23 = vld [vmem:[%s646_s5] ss:$0 sm:$0xff] }
  0x50   :  { %v314_v27 = vld [vmem:[%s647_s6] ss:$0 sm:$0xff]  ;;  %s515_s6 = smov [#allocation11]  }
  0x51   :  { %366 = vmatpush3.bf16.msra.mxu1 %v365_v12  ;;  %v315_v29 = vld [vmem:[%s648_s7] ss:$0 sm:$0xff]  ;;  %s299_s7 = sshll.u32 %s515_s6, 4  ;;  %s300_s7 = int_to_ptr.vmem [resolvable:$true] %s299_s7 }
  0x52   :  { %360 = vmatpush3.bf16.msra.mxu0 %v359_v13  ;;  %367 = vmatprep.subr.bf16.mxu1 %v512_v0  ;;  %s476_s21 = scalar_lea.vmem %s300_s7, 128  ;;  %p481_p5 = scmp.lt.s32.totalorder %s300_s7, %s300_s7 }
  0x53   :  { %p477_p4 = scmp.ne.s32.totalorder %s300_s7, %s476_s21  ;;  %p482_p6 = scmp.lt.s32.totalorder %s476_s21, %s476_s21 }
  0x55   :  { %369 = vmatpush3.bf16.msra.mxu1 %v368_v16  ;;  %338 = vmatmul.mubr.msk.f32.vlgmr.msra.gmra.mrb[0].mxu0 %vm98_vm1, %v85_v17  ;;  %p483_p7 = por %p482_p6, %p481_p5 }
  0x57   :  { %p484_p8 = pnand %p483_p7, %p477_p4 }
  0x58   :  { %353 = vmatmul.mubr.msk.f32.vlgmr.msra.gmra.mrb[0].mxu1 %vm186_vm2, %v86_v18 }
 0x128   :  { %v168_v20 = vpop.f32.mrb[0].mxu0 }
 0x129   :  { %v169_v21 = vadd.f32 %v310_v19, %v168_v20  ;;  %v339_v22 = vpop.f32.mrb[1].mxu0 }
 0x12b   :  { %380 = vtanh.f32 %v169_v21  ;;  %v256_v24 = vpop.f32.mrb[0].mxu1 }
 0x12c   :  { %v257_v25 = vadd.f32 %v312_v23, %v256_v24  ;;  %v354_v26 = vpop.f32.mrb[1].mxu1 }
 0x12e   :  { %382 = vtanh.f32 %v257_v25 }
 0x135   :  { %v381_v28 = vpop.eup %380 }
 0x136   :  { %v268_v30 = vmul.f32 %v381_v28, %v314_v27 }
 0x138   :  { %v383_v31 = vpop.eup %382 }
 0x139   :  { %v276_v32 = vmul.f32 %v383_v31, %v315_v29  ;;  %v289_v40 = vsub.f32 %v381_v28, %v383_v31 }
 0x13b   :  { %v277_v33 = vadd.f32 %v276_v32, %v268_v30 }
 0x13d   :  { %278 = vadd.xlane.f32.xlu0 %v277_v33 }
 0x1ca   :  { %v279_v35 = vpop.xlane.xlu0 %278 }
 0x1cb   :  { %v282_v36 = vadd.f32 %v281_v34, %v279_v35 }
 0x1cd   :  { %v316_v37 = vmul.f32 -1.442695, %v282_v36 }
 0x1cf   :  { %384 = vpow2.f32 %v316_v37 }
 0x1d9   :  { %v385_v38 = vpop.eup %384 }
 0x1da   :  { %v286_v39 = vadd.f32 1.0, %v385_v38 }
 0x1dc   :  { %386 = vrcp.f32 %v286_v39 }
 0x1e6   :  { %v387_v41 = vpop.eup %386 }
 0x1e7   :  { %v290_v42 = vmul.f32 %v387_v41, %v289_v40 }
 0x1e9   :  { %v291_v43 = vadd.f32 %v383_v31, %v290_v42 }
 0x1eb   :  { %292 = vst [vmem:[#allocation11] sm:$0xff] %v291_v43 }
 0x1ec   :  { %487 = shalt.err (!%p484_p8)
}
 0x1ed   :  { %s488_s12 = scalar_lea.hbm %s650_s9, 128 }
 0x1ee   :  { %p489_p9 = scmp.ne.s32.totalorder %s650_s9, %s488_s12  ;;  %p492_p10 = scmp.lt.u32.totalorder %s488_s12, %s650_s9 }
 0x1f0   :  { %p494_p11 = pnand %p492_p10, %p489_p9 }
 0x1f2   :  { %497 = shalt.err (!%p494_p11)
}
 0x1f3   :  { %302 = dma.vmem_to_hbm [thread:$0]  %s300_s7, 128, %s650_s9, [#allocation5]  }
 0x1f4   :  { %504 = dma.done.wait [#allocation5], 128  }
 0x1f5   :  { %505 = vsyncadd [#allocation5], 4294967168 }
 0x1f6   :  { %306 = vsyncpa [#allocation4], 1 }
 0x1f7   :  { %307 = vsyncpa [#allocation7], 1 }
 0x1f8   :  { %308 = vsyncpa [#allocation10], 1 }
 0x1f9   :  { %309 = vsyncpa [#allocation5], 1 }

</bundles_post_ra>
